<compile_context>
chip_gen: v7x
topology: tpu7x:2x2x1
jax: 0.10.0
libtpu: 0.0.40
codegen_flags: <defaults>
</compile_context>

<pallas_src>
import jax
import jax.numpy as jnp
from jax.experimental import pallas as pl
from jax.experimental.pallas import tpu as pltpu
import numpy as np


def attention_kernel(x_ref, wsel_ref, b_ref, o_ref):
    # x_ref:    (TB, S*F)  storage dtype (lane-dense)
    # wsel_ref: (S*F, S*F) storage dtype, block-diagonal selector (w replicated)
    # b_ref:    (1, S*F)   f32, bias replicated F times per step
    # o_ref:    (TB, F)
    TB, SF = x_ref.shape
    F = o_ref.shape[-1]
    S = SF // F

    x = x_ref[...]                                   # keep storage dtype

    # eij replicated across each F-wide lane segment:
    #   eij[t, s*F + f'] = sum_f w[f] * x[t, s, f]   for every f'
    # Single well-shaped MXU matmul (M=TB, K=S*F, N=S*F): one push per 8 rows.
    eij = jnp.dot(x, wsel_ref[...], preferred_element_type=jnp.float32)

    eij = jnp.tanh(eij + b_ref[...])                 # (TB, S*F) f32
    a = jnp.exp(eij)                                 # safe: eij in [-1, 1]

    # Every a[t, s] appears F times along the lane axis, so the full lane sum
    # equals F * sum_s a[t, s].
    denom = jnp.sum(a, axis=-1, keepdims=True) * (1.0 / F)   # (TB, 1) f32
    inv = 1.0 / denom                                # exact reciprocal (tiny tensor)
    # Matches PyTorch: a / sum(a) + 1e-10 (eps added AFTER the divide).
    a = a * inv + 1e-10                              # (TB, S*F) f32

    # Weighted sum over steps, exact f32 on the VPU:
    #   out[t, f] = sum_s a[t, s] * x[t, s*F + f]
    prod = a * x.astype(jnp.float32)                 # (TB, S*F) f32

    if S & (S - 1) == 0:
        # Fold the S segments pairwise: first fold is vreg-aligned (+S*F/2),
        # later folds are cheap in-vreg lane shifts on the XLU.
        width = SF
        p = prod
        while width > F:
            width //= 2
            p = p[:, :width] + p[:, width:]
    else:
        p = prod[:, :F]
        for s in range(1, S):
            p = p + prod[:, s * F:(s + 1) * F]

    o_ref[...] = p.astype(o_ref.dtype)


def _vmem_limit_bytes():
    """Generation-aware scoped-VMEM limit: ~3/4 of physical, capped at 96 MiB."""
    try:
        cap = int(pltpu.get_tpu_info().vmem_capacity_bytes)
    except Exception:
        cap = 64 * 1024 * 1024       # conservative (v7x-sized) fallback
    return min(cap * 3 // 4, 96 * 1024 * 1024)


def _choose_block_b(B, S, F, x_itemsize, out_itemsize, vmem_limit_bytes, min_tb):
    """Largest row tile that fits ~half the VMEM limit (lane-dense accounting).

    Per row we count: 2x double-buffered x block, ~4 f32 x-row-sized kernel
    intermediates (eij / a / prod + slack), 2x double-buffered output rows.
    Keeps >= 2 grid steps when the batch allows it (v7x megacore + pipelining).
    """
    sf = S * F
    per_row = 2 * sf * x_itemsize + 4 * sf * 4 + 2 * F * out_itemsize
    budget = vmem_limit_bytes // 2          # headroom for Wsel, bias, misc
    tb = max(min_tb, (budget // per_row) // min_tb * min_tb)
    b_ceil = pl.cdiv(B, min_tb) * min_tb
    if tb >= b_ceil:
        tb = b_ceil
        if b_ceil >= 2 * min_tb:
            tb = max(min_tb, (b_ceil // 2) // min_tb * min_tb)
    return tb


def attention_forward(x, weight, bias_b, *, block_b=None):
    """x: (B, S, F); weight: (F, 1); bias_b: (S,). Returns (B, F)."""
    B, S, F = x.shape
    dtype = x.dtype
    sf = S * F

    # Lane-dense view of x: free (row-major contiguous reshape), S*F=256 lanes.
    x2 = x.reshape(B, sf)

    # Block-diagonal selector: wsel[s*F + f, s'*F + f'] = w[f] * (s == s').
    w_col = weight.reshape(F, 1).astype(jnp.float32)
    wsel = jnp.kron(jnp.eye(S, dtype=jnp.float32),
                    jnp.broadcast_to(w_col, (F, F))).astype(dtype)
    # Bias replicated F times per step: b_rep[0, s*F + f] = b[s].
    b_rep = jnp.repeat(bias_b.astype(jnp.float32), F).reshape(1, sf)

    x_isz = jnp.dtype(dtype).itemsize
    min_tb = max(8, 32 // max(x_isz, 1))     # 8 rows for f32, 16 for bf16
    vmem_limit = _vmem_limit_bytes()
    if block_b is None:
        block_b = _choose_block_b(B, S, F, x_isz, x_isz, vmem_limit, min_tb)
    block_b = max(min_tb, (block_b // min_tb) * min_tb)

    # Ragged batches are handled by Pallas edge masking (no full-array jnp.pad,
    # no extra HBM read+write): garbage rows in the last block only feed their
    # own out-of-bounds output rows, which are dropped on store.
    grid = (pl.cdiv(B, block_b),)

    out = pl.pallas_call(
        attention_kernel,
        out_shape=jax.ShapeDtypeStruct((B, F), dtype),
        grid_spec=pltpu.PrefetchScalarGridSpec(
            num_scalar_prefetch=0,
            grid=grid,
            in_specs=[
                pl.BlockSpec((block_b, sf), lambda i: (i, 0)),   # x tile (lane-dense)
                pl.BlockSpec((sf, sf), lambda i: (0, 0)),        # selector (reused)
                pl.BlockSpec((1, sf), lambda i: (0, 0)),         # bias (reused)
            ],
            out_specs=pl.BlockSpec((block_b, F), lambda i: (i, 0)),
        ),
        compiler_params=pltpu.CompilerParams(
            dimension_semantics=("parallel",),   # shard batch across TCs (v7x)
            vmem_limit_bytes=vmem_limit,
        ),
    )(x2, wsel, b_rep)
    return out


def init_params(feature_dim, step_dim, key):
    # xavier_uniform_ on a (feature_dim, 1) tensor: bound = sqrt(6/(fan_in+fan_out))
    bound = float(np.sqrt(6.0 / (feature_dim + 1)))
    weight = jax.random.uniform(
        key, (feature_dim, 1), minval=-bound, maxval=bound, dtype=jnp.float32
    )
    b = jnp.zeros((step_dim,), dtype=jnp.float32)
    return weight, b


def reference_forward(x, weight, b):
    # pure-JAX reference mirroring the PyTorch code (mask=None path)
    B, S, F = x.shape
    eij = (x.reshape(-1, F) @ weight).reshape(-1, S) + b
    eij = jnp.tanh(eij)
    a = jnp.exp(eij)
    a = a / jnp.sum(a, axis=1, keepdims=True) + 1e-10
    return jnp.sum(x * a[:, :, None], axis=1)


if __name__ == "__main__":
    key = jax.random.PRNGKey(0)
    k_x, k_w = jax.random.split(key)

    B, S, F = 12, 8, 32           # batch, step_dim, feature_dim
    x = jax.random.normal(k_x, (B, S, F), dtype=jnp.float32)
    weight, b = init_params(F, S, k_w)

    # Multi-block ragged path: block_b=8 -> grid=(2,), last block masks rows 12..15.
    out_blocked = jax.block_until_ready(attention_forward(x, weight, b, block_b=8))
    # Auto-selected block size path.
    out_auto = jax.block_until_ready(attention_forward(x, weight, b))

    ref = reference_forward(x, weight, b)
    # Only remaining error source is the single default-precision (bf16-pass)
    # MXU contraction for eij; reciprocal is exact and the second contraction
    # is exact f32 on the VPU.  Structural errors would be O(1e-1).
    np.testing.assert_allclose(np.asarray(out_blocked), np.asarray(ref),
                               rtol=1e-2, atol=5e-3)
    np.testing.assert_allclose(np.asarray(out_auto), np.asarray(ref),
                               rtol=1e-2, atol=5e-3)

    print("KERNEL_OK")
</pallas_src>

<mosaic_0001>
module attributes {stable_mosaic.version = 11 : i64} {
  func.func @attention_kernel(%arg0: i32, %arg1: memref<8x256xf32, #tpu.memory_space<vmem>>, %arg2: memref<256x256xf32, #tpu.memory_space<vmem>>, %arg3: memref<1x256xf32, #tpu.memory_space<vmem>>, %arg4: memref<8x32xf32, #tpu.memory_space<vmem>>) attributes {dimension_semantics = [#tpu.dimension_semantics<parallel>], iteration_bounds = array<i64: 2>, scalar_prefetch = 0 : i64, scratch_operands = 0 : i64, tpu.core_type = #tpu.core_type<tc>, window_params = [{transform_indices = @transform_0, window_bounds = array<i64: 8, 256>}, {pipeline_mode = #tpu.pipeline_mode<synchronous>, transform_indices = @transform_1, window_bounds = array<i64: 256, 256>}, {pipeline_mode = #tpu.pipeline_mode<synchronous>, transform_indices = @transform_2, window_bounds = array<i64: 1, 256>}, {transform_indices = @transform_3, window_bounds = array<i64: 8, 32>}]} {
    %c0 = arith.constant 0 : index
    %c0_0 = arith.constant 0 : index
    %0 = vector.load %arg1[%c0, %c0_0] : memref<8x256xf32, #tpu.memory_space<vmem>>, vector<8x256xf32>
    %c0_1 = arith.constant 0 : index
    %c0_2 = arith.constant 0 : index
    %1 = vector.load %arg2[%c0_1, %c0_2] : memref<256x256xf32, #tpu.memory_space<vmem>>, vector<256x256xf32>
    %cst = arith.constant dense<0.000000e+00> : vector<8x256xf32>
    %2 = tpu.matmul %0, %1, %cst {dimension_numbers = #tpu.dot_dimension_numbers<[1], [0], [0], [1], [0, 0, 1, 1], [], []>} : vector<8x256xf32>, vector<256x256xf32>, vector<8x256xf32> -> vector<8x256xf32>
    %c0_3 = arith.constant 0 : index
    %c0_4 = arith.constant 0 : index
    %3 = vector.load %arg3[%c0_3, %c0_4] : memref<1x256xf32, #tpu.memory_space<vmem>>, vector<1x256xf32>
    %4 = vector.broadcast %3 : vector<1x256xf32> to vector<8x256xf32>
    %5 = arith.addf %2, %4 : vector<8x256xf32>
    %6 = math.tanh %5 : vector<8x256xf32>
    %7 = math.exp %6 : vector<8x256xf32>
    %cst_5 = arith.constant dense<0.000000e+00> : vector<8xf32>
    %8 = vector.multi_reduction <add>, %7, %cst_5 [1] : vector<8x256xf32> to vector<8xf32>
    %9 = vector.shape_cast %8 : vector<8xf32> to vector<8x1xf32>
    %cst_6 = arith.constant 3.125000e-02 : f32
    %10 = vector.broadcast %cst_6 : f32 to vector<8x1xf32>
    %11 = arith.mulf %9, %10 : vector<8x1xf32>
    %cst_7 = arith.constant 1.000000e+00 : f32
    %12 = vector.broadcast %cst_7 : f32 to vector<8x1xf32>
    %13 = arith.divf %12, %11 : vector<8x1xf32>
    %14 = vector.broadcast %13 : vector<8x1xf32> to vector<8x256xf32>
    %15 = arith.mulf %7, %14 : vector<8x256xf32>
    %cst_8 = arith.constant 1.000000e-10 : f32
    %16 = vector.broadcast %cst_8 : f32 to vector<8x256xf32>
    %17 = arith.addf %15, %16 : vector<8x256xf32>
    %18 = arith.mulf %17, %0 : vector<8x256xf32>
    %19 = vector.extract_strided_slice %18 {offsets = [0, 0], sizes = [8, 128], strides = [1, 1]} : vector<8x256xf32> to vector<8x128xf32>
    %20 = vector.extract_strided_slice %18 {offsets = [0, 128], sizes = [8, 128], strides = [1, 1]} : vector<8x256xf32> to vector<8x128xf32>
    %21 = arith.addf %19, %20 : vector<8x128xf32>
    %22 = vector.extract_strided_slice %21 {offsets = [0, 0], sizes = [8, 64], strides = [1, 1]} : vector<8x128xf32> to vector<8x64xf32>
    %23 = vector.extract_strided_slice %21 {offsets = [0, 64], sizes = [8, 64], strides = [1, 1]} : vector<8x128xf32> to vector<8x64xf32>
    %24 = arith.addf %22, %23 : vector<8x64xf32>
    %25 = vector.extract_strided_slice %24 {offsets = [0, 0], sizes = [8, 32], strides = [1, 1]} : vector<8x64xf32> to vector<8x32xf32>
    %26 = vector.extract_strided_slice %24 {offsets = [0, 32], sizes = [8, 32], strides = [1, 1]} : vector<8x64xf32> to vector<8x32xf32>
    %27 = arith.addf %25, %26 : vector<8x32xf32>
    %c0_9 = arith.constant 0 : index
    %c0_10 = arith.constant 0 : index
    %28 = vector.load %arg4[%c0_9, %c0_10] : memref<8x32xf32, #tpu.memory_space<vmem>>, vector<8x32xf32>
    tpu.vector_store %arg4[%c0_9, %c0_10], %27 {strides = array<i32>} : memref<8x32xf32, #tpu.memory_space<vmem>>, vector<8x32xf32>,
    return
  }
  func.func @transform_0(%arg0: i32) -> (i32, i32) {
    %c0_i32 = arith.constant 0 : i32
    %c0_i32_0 = arith.constant 0 : i32
    return %arg0, %c0_i32 : i32, i32
  }
  func.func @transform_1(%arg0: i32) -> (i32, i32) {
    %c0_i32 = arith.constant 0 : i32
    %c0_i32_0 = arith.constant 0 : i32
    %c0_i32_1 = arith.constant 0 : i32
    return %c0_i32, %c0_i32_0 : i32, i32
  }
  func.func @transform_2(%arg0: i32) -> (i32, i32) {
    %c0_i32 = arith.constant 0 : i32
    %c0_i32_0 = arith.constant 0 : i32
    %c0_i32_1 = arith.constant 0 : i32
    return %c0_i32, %c0_i32_0 : i32, i32
  }
  func.func @transform_3(%arg0: i32) -> (i32, i32) {
    %c0_i32 = arith.constant 0 : i32
    %c0_i32_0 = arith.constant 0 : i32
    return %arg0, %c0_i32 : i32, i32
  }
}

</mosaic_0001>

<bundles_post_ra>
// kernel: tpu_custom_call.1
= control target key start
LH: loop header
LB: loop body
LE: loop exit
PB: predicated region body
PF: predicated region fallthrough
CT: control target
= control target key end

     0   :  { %8 = vsyncpa [#allocation3], 0  ;;  %s992_s0 = inlined_call_operand.hbm [shape: f32[12,256], index: 0, kind: input, shape index: {}]   ;;  %s993_s1 = inlined_call_operand.hbm [shape: f32[256,256], index: 1, kind: input, shape index: {}]   ;;  %s994_s2 = inlined_call_operand.vmem [shape: f32[1,256], index: 2, kind: input, shape index: {}]   ;;  %s995_s3 = inlined_call_operand.hbm [shape: f32[12,32], index: 3, kind: output, shape index: {}]  }
   0x1   :  { %10 = vsyncpa [#allocation3 + $0x1], 0 }
   0x2   :  { %11 = vsyncpa [#allocation6], 0 }
   0x3   :  { %12 = vsyncpa [#allocation4], 0 }
   0x4   :  { %14 = vsyncpa [#allocation4 + $0x1], 0  ;;  %s784_s12 = smov 0   ;;  %s786_s13 = smov 0  }
   0x5   :  { %s788_s14 = smov 0   ;;  %s790_s15 = smov 0  }
   0x6 LB: > { %s805_s16 = sadd.s32 4294967295, %s755_s15   ;;  %s476_s17 = sadd.s32 4294967294, %s755_s15   ;;  %s755_s15 = sphi %s790_s15, %s1015_s15   ;;  %s751_s14 = sphi %s788_s14, %s1014_s14   ;;  %s747_s13 = sphi %s786_s13, %s1013_s13   ;;  %s743_s12 = sphi %s784_s12, %s1012_s12  }
   0x7   : > { %p40_p0 = scmp.ne.s32.totalorder %s747_s13, %s743_s12  ;;  %p996_p1 = scmp.eq.s32.totalorder %s805_s16, 0 }
   0x8   : > { %p112_p3 = scmp.eq.s32.totalorder %s476_s17, 1  ;;  %p477_p5 = scmp.ge.s32.totalorder %s755_s15, 1 }
   0x9   : > { %p814_p4 = por %p996_p1, %p40_p0  ;;  %p119_p7 = scmp.lt.s32.totalorder %s755_s15, 3 }
   0xa   : > { %p819_p6 = por %p112_p3, %p40_p0  ;;  %s757_s21 = smov [#allocation5]  }
   0xb   : > { %s999_s18 = scalar_select %p814_p4, 1, 0 }
   0xc   : > { %s1000_s19 = scalar_select %p819_p6, 1, 0 }
   0xd   : > { %p824_p8 = pnand %p477_p5, %p119_p7  ;;  %s131_s22 = sshll.u32 %s757_s21, 4  ;;  %s828_s22 = int_to_ptr.vmem [resolvable:$true] %s131_s22 }
   0xe   : > { %s840_s24 = sadd.s32 1, %s755_s15   ;;  %s27_s25 = sadd.s32 1, %s751_s14 }
   0xf   : > { %s1001_s20 = scalar_select %p824_p8, 1, 0 }
  0x10   : > { %p564_p9 = pneg %p824_p8  ;;  %s24_s26 = ssub.s32 %s755_s15, %s840_s24 }
  0x11   : > { %s627_s29 = scalar_lea.hbm %s993_s1, 8192 }
  0x12   : > { %p835_p11 = pnand %p564_p9, %p996_p1  ;;  %p628_p12 = scmp.ne.s32.totalorder %s993_s1, %s627_s29 }
  0x13   : > { %p634_p5 = scmp.lt.u32.totalorder %s627_s29, %s993_s1 }
  0x14   : > { %p629_p13 = pneg %p835_p11 }
  0x16   : > { %p630_p0 = pnand %p629_p13, %p628_p12 }
  0x18   : > { %p631_p3 = pneg %p630_p0 }
  0x1a   : > { %p636_p7 = pnand %p634_p5, %p631_p3 }
  0x1c   : > { %639 = shalt.err (!%p636_p7)
}
  0x1d   : > { %s640_s7 = scalar_lea.vmem %s828_s22, 8192  ;;  %p648_p2 = scmp.lt.s32.totalorder %s828_s22, %s828_s22 }
  0x1e   : > { %p641_p9 = scmp.ne.s32.totalorder %s828_s22, %s640_s7  ;;  %p649_p6 = scmp.lt.s32.totalorder %s640_s7, %s640_s7 }
  0x20   : > { %p643_p10 = pnand %p641_p9, %p629_p13  ;;  %p650_p4 = por %p649_p6, %p648_p2 }
  0x22   : > { %p644_p1 = pneg %p643_p10 }
  0x24   : > { %p651_p8 = pnand %p650_p4, %p644_p1 }
  0x26   : > { %654 = shalt.err (!%p651_p8)
}
  0x27   : > { %s758_s8 = smov 256   ;;  %s759_s9 = smov 16  }
  0x28   : > { %567 = dma.hbm_to_vmem [thread:$0]  (!%p835_p11), %s993_s1, 8192, %s828_s22, [#allocation6], %s758_s8, %s758_s8, %s759_s9  }
  0x29   : > { %p25_p2 = scmp.eq.s32.totalorder %s24_s26, 0  ;;  %p34_p1 = scmp.ne.s32.totalorder %s751_s14, %s747_s13 }
  0x2a   : > { %p35_p4 = scmp.eq.s32.totalorder %s755_s15, 0  ;;  %p577_p6 = scmp.lt.s32.totalorder %s755_s15, 2 }
  0x2b   : > { %s871_s17 = scalar_select %p25_p2, %s751_s14, %s27_s25  }
  0x2c   : > { %p36_p8 = por %p35_p4, %p34_p1  ;;  %p1003_p10 = scmp.eq.s32.totalorder %s805_s16, 1 }
  0x2d   : > { %s148_s27 = sand.u32 1, %s751_s14   ;;  %s491_s28 = sshll.u32 %s755_s15, 8 }
  0x2e   : > { %p875_p12 = por %p1003_p10, %p34_p1  ;;  %s480_s29 = sshll.u32 %s148_s27, 4 }
  0x2f   : > { %s884_s4 = scalar_lea.hbm %s992_s0, %s491_s28  ;;  %s152_s22 = scalar_lea.vmem [#allocation2], %s480_s29 }
  0x30   : > { %s160_s25 = sshll.u32 %s152_s22, 4  ;;  %p886_p11 = pnand %p577_p6, %p36_p8  ;;  %s890_s25 = int_to_ptr.vmem [resolvable:$true] %s160_s25 }
  0x31   : > { %s149_s5 = scalar_lea.sflag [#allocation3], %s148_s27  ;;  %s655_s6 = scalar_lea.hbm %s884_s4, 256 }
  0x32   : > { %p656_p13 = scmp.ne.s32.totalorder %s884_s4, %s655_s6  ;;  %p657_p0 = pneg %p886_p11 }
  0x33   : > { %s660_s9 = scalar_lea.hbm %s992_s0, 512  ;;  %p661_p7 = scmp.lt.u32.totalorder %s884_s4, %s992_s0 }
  0x34   : > { %p658_p3 = pnand %p657_p0, %p656_p13  ;;  %p662_p9 = scmp.lt.u32.totalorder %s660_s9, %s655_s6 }
  0x35   : > { %p664_p1 = scmp.lt.u32.totalorder %s655_s6, %s884_s4 }
  0x36   : > { %p659_p5 = pneg %p658_p3  ;;  %p663_p2 = por %p662_p9, %p661_p7 }
  0x38   : > { %p665_p4 = por %p664_p1, %p663_p2 }
  0x3a   : > { %p666_p6 = pnand %p665_p4, %p659_p5 }
  0x3c   : > { %669 = shalt.err (!%p666_p6)
}
  0x3d   : > { %s670_s27 = scalar_lea.vmem %s890_s25, 256  ;;  %s760_s28 = smov [#allocation2]  }
  0x3e   : > { %p671_p8 = scmp.ne.s32.totalorder %s890_s25, %s670_s27  ;;  %s675_s29 = sshll.u32 %s760_s28, 4  ;;  %s676_s29 = int_to_ptr.vmem [resolvable:$false] %s675_s29 }
  0x3f   : > { %s677_s23 = scalar_lea.vmem %s676_s29, 512  ;;  %p678_p3 = scmp.lt.s32.totalorder %s890_s25, %s676_s29 }
  0x40   : > { %p673_p10 = pnand %p671_p8, %p657_p0  ;;  %p679_p7 = scmp.lt.s32.totalorder %s677_s23, %s670_s27 }
  0x42   : > { %p674_p13 = pneg %p673_p10  ;;  %p680_p9 = por %p679_p7, %p678_p3 }
  0x44   : > { %p681_p2 = pnand %p680_p9, %p674_p13 }
  0x46   : > { %684 = shalt.err (!%p681_p2)
}
  0x47   : > { %571 = dma.hbm_to_vmem [thread:$0]  (!%p886_p11), %s884_s4, 256, %s890_s25, %s149_s5  }
  0x48   : > { %p1006_p5 = scmp.ne.s32.totalorder %s1001_s20, 0 }
  0x49   : > { %s920_s30 = sand.u32 (!%p1006_p5), 1, %s747_s13   ;;  %p1007_p0 = scmp.ne.s32.totalorder (!%p1006_p5), %s999_s18, 0 }
  0x4a   : > { %169 = sbr.rel (%p1006_p5) target bundleno = 804 (0x324), region = 32  ;;  %s484_s22 = sshll.u32 (!%p1006_p5), %s920_s30, 4 }
  0x4b   : > { %s172_s6 = scalar_lea.sflag (!%p1006_p5), [#allocation3], %s920_s30  ;;  %s924_s7 = scalar_lea.vmem (!%p1006_p5), [#allocation2], %s484_s22 }
  0x51   : > { %730 = dma.done.wait (%p1007_p0), %s172_s6, 256  }
  0x52   : > { %732 = vsyncadd (%p1007_p0), %s172_s6, 4294967040  ;;  %p1008_p11 = scmp.eq.s32.totalorder %s805_s16, 0 }
  0x54   : > { %734 = dma.done.wait (%p1008_p11), [#allocation6], 8192   ;;  %p1009_p1 = pmov %p1008_p11 }
  0x55   : > { %v205_v0 = vld [vmem:[#allocation5 + $0x8] sm:$0xff]  ;;  %v207_v1 = vld [vmem:[#allocation5 + $0x18] sm:$0xff]  ;;  %v204_v2 = vld [vmem:[#allocation5] sm:$0xff]  ;;  %s761_s4 = smov 64   ;;  %s762_s25 = smov 96   ;;  %vm380_vm0 = vcmask 261120  }
  0x56   : > { %736 = vsyncadd (%p1009_p1), [#allocation6], 4294959104  ;;  %v492_v3 = vpack.c.bf16 %v207_v1, %v205_v0  ;;  %v206_v4 = vld [vmem:[#allocation5 + $0x10] sm:$0xff]  ;;  %v209_v5 = vld [vmem:[#allocation5 + $0x28] sm:$0xff]  ;;  %s486_s26 = sshll.u32 %s920_s30, 3  ;;  %s488_s5 = sshll.u32 %s805_s16, 7 }
  0x57   : > { %v211_v6 = vld [vmem:[#allocation5 + $0x38] sm:$0xff]  ;;  %v494_v7 = vpack.c.bf16 %v206_v4, %v204_v2  ;;  %v208_v9 = vld [vmem:[#allocation5 + $0x20] sm:$0xff]  ;;  %v210_v10 = vld [vmem:[#allocation5 + $0x30] sm:$0xff]  ;;  %s201_s8 = scalar_lea.vmem [#allocation7], %s486_s26  ;;  %s948_s27 = scalar_lea.hbm %s995_s3, %s488_s5 }
  0x58   : > { %v496_v8 = vpack.c.bf16 %v211_v6, %v209_v5  ;;  %v213_v11 = vld [vmem:[#allocation5 + $0x48] sm:$0xff]  ;;  %493 = vmatprep.subr.bf16.mxu0 %v492_v3  ;;  %v215_v12 = vld [vmem:[#allocation5 + $0x58] sm:$0xff]  ;;  %v498_v13 = vpack.c.bf16 %v210_v10, %v208_v9  ;;  %v212_v15 = vld [vmem:[#allocation5 + $0x40] sm:$0xff]  ;;  %s396_s9 = sshll.u32 %s201_s8, 4  ;;  %s383_s28 = scalar_lea.sflag [#allocation4], %s920_s30  ;;  %s950_s9 = int_to_ptr.vmem [resolvable:$true] %s396_s9 }
  0x59   : > { %495 = vmatpush1.bf16.msra.mxu0 %v494_v7  ;;  %v500_v14 = vpack.c.bf16 %v215_v12, %v213_v11  ;;  %v214_v16 = vld [vmem:[#allocation5 + $0x50] sm:$0xff]  ;;  %v217_v17 = vld [vmem:[#allocation5 + $0x68] sm:$0xff]  ;;  %v219_v18 = vld [vmem:[#allocation5 + $0x78] sm:$0xff]  ;;  %s685_s29 = scalar_lea.vmem %s950_s9, 128  ;;  %s763_s16 = smov [#allocation7]  }
  0x5a   : > { %497 = vmatprep.subr.bf16.mxu0 %v496_v8  ;;  %v502_v19 = vpack.c.bf16 %v214_v16, %v212_v15  ;;  %v504_v20 = vpack.c.bf16 %v219_v18, %v217_v17  ;;  %v216_v21 = vld [vmem:[#allocation5 + $0x60] sm:$0xff]  ;;  %v218_v22 = vld [vmem:[#allocation5 + $0x70] sm:$0xff]  ;;  %v221_v23 = vld [vmem:[#allocation5 + $0x88] sm:$0xff]  ;;  %p686_p4 = scmp.ne.s32.totalorder %s950_s9, %s685_s29  ;;  %s689_s23 = sshll.u32 %s763_s16, 4  ;;  %s690_s23 = int_to_ptr.vmem [resolvable:$false] %s689_s23 }
  0x5b   : > { %v223_v24 = vld [vmem:[#allocation5 + $0x98] sm:$0xff]  ;;  %v506_v25 = vpack.c.bf16 %v218_v22, %v216_v21  ;;  %v220_v27 = vld [vmem:[#allocation5 + $0x80] sm:$0xff]  ;;  %v222_v28 = vld [vmem:[#allocation5 + $0x90] sm:$0xff]  ;;  %s691_s22 = scalar_lea.vmem %s690_s23, 256  ;;  %p692_p10 = scmp.lt.s32.totalorder %s950_s9, %s690_s23 }
  0x5c   : > { %v508_v26 = vpack.c.bf16 %v223_v24, %v221_v23  ;;  %v225_v29 = vld [vmem:[#allocation5 + $0xa8] sm:$0xff]  ;;  %v227_v30 = vld [vmem:[#allocation5 + $0xb8] sm:$0xff]  ;;  %v510_v31 = vpack.c.bf16 %v222_v28, %v220_v27  ;;  %v224_v33 = vld [vmem:[#allocation5 + $0xa0] sm:$0xff]  ;;  %p687_p6 = pnand %p686_p4, %p875_p12  ;;  %p693_p13 = scmp.lt.s32.totalorder %s691_s22, %s685_s29 }
  0x5d   : > { %499 = vmatpush1.bf16.msra.mxu0 %v498_v13  ;;  %v512_v32 = vpack.c.bf16 %v227_v30, %v225_v29  ;;  %v226_v34 = vld [vmem:[#allocation5 + $0xb0] sm:$0xff]  ;;  %v229_v35 = vld [vmem:[#allocation5 + $0xc8] sm:$0xff]  ;;  %v231_v36 = vld [vmem:[#allocation5 + $0xd8] sm:$0xff] }
  0x5e   : > { %501 = vmatprep.subr.bf16.mxu0 %v500_v14  ;;  %v514_v37 = vpack.c.bf16 %v226_v34, %v224_v33  ;;  %v516_v38 = vpack.c.bf16 %v231_v36, %v229_v35  ;;  %v228_v39 = vld [vmem:[#allocation5 + $0xc0] sm:$0xff]  ;;  %v230_v40 = vld [vmem:[#allocation5 + $0xd0] sm:$0xff]  ;;  %v935_v41 = vld [vmem:[%s924_s7 + $0x8] sm:$0xff]  ;;  %v270_v34 = vlaneseq  ;;  %p688_p8 = pneg %p687_p6  ;;  %p694_p3 = por %p693_p13, %p692_p10 }
  0x5f   : > { %v233_v42 = vld [vmem:[#allocation5 + $0xe8] sm:$0xff]  ;;  %v235_v43 = vld [vmem:[#allocation5 + $0xf8] sm:$0xff]  ;;  %344 = vmatprep.mubr.f32.mxu0 %v935_v41  ;;  %v518_v44 = vpack.c.bf16 %v230_v40, %v228_v39  ;;  %v232_v46 = vld [vmem:[#allocation5 + $0xe0] sm:$0xff] }
  0x60   : > { %v520_v45 = vpack.c.bf16 %v235_v43, %v233_v42  ;;  %v234_v47 = vld [vmem:[#allocation5 + $0xf0] sm:$0xff]  ;;  %v237_v48 = vld [vmem:[#allocation5 + $0x108] sm:$0xff]  ;;  %v239_v49 = vld [vmem:[#allocation5 + $0x118] sm:$0xff]  ;;  %v271_v35 = vshrl.u32 %v270_v34, 7  ;;  %p695_p7 = pnand %p694_p3, %p688_p8 }
  0x61   : > { %503 = vmatpush1.bf16.msra.mxu0 %v502_v19  ;;  %v522_v50 = vpack.c.bf16 %v234_v47, %v232_v46  ;;  %v524_v51 = vpack.c.bf16 %v239_v49, %v237_v48  ;;  %v236_v52 = vld [vmem:[#allocation5 + $0x100] sm:$0xff]  ;;  %v238_v53 = vld [vmem:[#allocation5 + $0x110] sm:$0xff]  ;;  %v241_v54 = vld [vmem:[#allocation5 + $0x128] sm:$0xff] }
  0x62   : > { %505 = vmatprep.subr.bf16.mxu0 %v504_v20  ;;  %v243_v55 = vld [vmem:[#allocation5 + $0x138] sm:$0xff]  ;;  %v526_v56 = vpack.c.bf16 %v238_v53, %v236_v52  ;;  %v240_v58 = vld [vmem:[#allocation5 + $0x120] sm:$0xff]  ;;  %v242_v59 = vld [vmem:[#allocation5 + $0x130] sm:$0xff]  ;;  %v272_v36 = vsub.s32 0, %v271_v35 }
  0x63   : > { %v528_v57 = vpack.c.bf16 %v243_v55, %v241_v54  ;;  %v245_v60 = vld [vmem:[#allocation5 + $0x148] sm:$0xff]  ;;  %v247_v61 = vld [vmem:[#allocation5 + $0x158] sm:$0xff]  ;;  %v530_v62 = vpack.c.bf16 %v242_v59, %v240_v58  ;;  %v244_v0 = vld [vmem:[#allocation5 + $0x140] sm:$0xff] }
  0x64   : > { %v532_v63 = vpack.c.bf16 %v247_v61, %v245_v60  ;;  %v246_v1 = vld [vmem:[#allocation5 + $0x150] sm:$0xff]  ;;  %v249_v2 = vld [vmem:[#allocation5 + $0x168] sm:$0xff]  ;;  %v251_v3 = vld [vmem:[#allocation5 + $0x178] sm:$0xff] }
  0x65   : > { %507 = vmatpush1.bf16.msra.mxu0 %v506_v25  ;;  %v534_v4 = vpack.c.bf16 %v246_v1, %v244_v0  ;;  %v536_v5 = vpack.c.bf16 %v251_v3, %v249_v2  ;;  %v248_v6 = vld [vmem:[#allocation5 + $0x160] sm:$0xff]  ;;  %v250_v7 = vld [vmem:[#allocation5 + $0x170] sm:$0xff]  ;;  %v253_v8 = vld [vmem:[#allocation5 + $0x188] sm:$0xff] }
  0x66   : > { %509 = vmatprep.subr.bf16.mxu0 %v508_v26  ;;  %v255_v9 = vld [vmem:[#allocation5 + $0x198] sm:$0xff]  ;;  %v538_v10 = vpack.c.bf16 %v250_v7, %v248_v6  ;;  %v252_v12 = vld [vmem:[#allocation5 + $0x180] sm:$0xff]  ;;  %v254_v13 = vld [vmem:[#allocation5 + $0x190] sm:$0xff] }
  0x67   : > { %v540_v11 = vpack.c.bf16 %v255_v9, %v253_v8  ;;  %v257_v14 = vld [vmem:[#allocation5 + $0x1a8] sm:$0xff]  ;;  %v259_v15 = vld [vmem:[#allocation5 + $0x1b8] sm:$0xff]  ;;  %v542_v16 = vpack.c.bf16 %v254_v13, %v252_v12  ;;  %v256_v18 = vld [vmem:[#allocation5 + $0x1a0] sm:$0xff] }
  0x68   : > { %v544_v17 = vpack.c.bf16 %v259_v15, %v257_v14  ;;  %v258_v19 = vld [vmem:[#allocation5 + $0x1b0] sm:$0xff]  ;;  %v261_v20 = vld [vmem:[#allocation5 + $0x1c8] sm:$0xff]  ;;  %v263_v21 = vld [vmem:[#allocation5 + $0x1d8] sm:$0xff] }
  0x69   : > { %511 = vmatpush1.bf16.msra.mxu0 %v510_v31  ;;  %v546_v22 = vpack.c.bf16 %v258_v19, %v256_v18  ;;  %v548_v23 = vpack.c.bf16 %v263_v21, %v261_v20  ;;  %v260_v24 = vld [vmem:[#allocation5 + $0x1c0] sm:$0xff]  ;;  %v262_v25 = vld [vmem:[#allocation5 + $0x1d0] sm:$0xff]  ;;  %v265_v26 = vld [vmem:[#allocation5 + $0x1e8] sm:$0xff] }
  0x6a   : > { %513 = vmatprep.subr.bf16.mxu0 %v512_v32  ;;  %v267_v27 = vld [vmem:[#allocation5 + $0x1f8] sm:$0xff]  ;;  %v550_v28 = vpack.c.bf16 %v262_v25, %v260_v24  ;;  %v264_v30 = vld [vmem:[#allocation5 + $0x1e0] sm:$0xff]  ;;  %v266_v31 = vld [vmem:[#allocation5 + $0x1f0] sm:$0xff] }
  0x6b   : > { %v552_v29 = vpack.c.bf16 %v267_v27, %v265_v26  ;;  %v554_v32 = vpack.c.bf16 %v266_v31, %v264_v30  ;;  %v202_v33 = vld [vmem:[%s924_s7] sm:$0xff] }
  0x6d   : > { %515 = vmatpush1.bf16.msra.mxu0 %v514_v37  ;;  %v268_v37 = vld [vmem:[%s994_s2] sm:$0x3] }
  0x6e   : > { %517 = vmatprep.subr.bf16.mxu0 %v516_v38  ;;  %v276_v38 = vsub.s32 1, %v271_v35  ;;  %v273_v39 = vrot.slane %v268_v37, %v272_v36 }
  0x70   : > { %v277_v40 = vrot.slane %v268_v37, %v276_v38 }
  0x71   : > { %519 = vmatpush1.bf16.msra.mxu0 %v518_v44 }
  0x72   : > { %521 = vmatprep.subr.bf16.mxu0 %v520_v45 }
  0x75   : > { %523 = vmatpush1.bf16.msra.mxu0 %v522_v50 }
  0x76   : > { %525 = vmatprep.subr.bf16.mxu0 %v524_v51 }
  0x79   : > { %527 = vmatpush1.bf16.msra.mxu0 %v526_v56 }
  0x7a   : > { %529 = vmatprep.subr.bf16.mxu0 %v528_v57 }
  0x7d   : > { %531 = vmatpush1.bf16.msra.mxu0 %v530_v62 }
  0x7e   : > { %533 = vmatprep.subr.bf16.mxu0 %v532_v63 }
  0x81   : > { %535 = vmatpush1.bf16.msra.mxu0 %v534_v4 }
  0x82   : > { %537 = vmatprep.subr.bf16.mxu0 %v536_v5 }
  0x85   : > { %539 = vmatpush1.bf16.msra.mxu0 %v538_v10 }
  0x86   : > { %541 = vmatprep.subr.bf16.mxu0 %v540_v11 }
  0x89   : > { %543 = vmatpush1.bf16.msra.mxu0 %v542_v16 }
  0x8a   : > { %545 = vmatprep.subr.bf16.mxu0 %v544_v17 }
  0x8d   : > { %547 = vmatpush1.bf16.msra.mxu0 %v546_v22 }
  0x8e   : > { %549 = vmatprep.subr.bf16.mxu0 %v548_v23 }
  0x91   : > { %551 = vmatpush1.bf16.msra.mxu0 %v550_v28 }
  0x92   : > { %553 = vmatprep.subr.bf16.mxu0 %v552_v29 }
  0x95   : > { %555 = vmatpush1.bf16.msra.mxu0 %v554_v32 }
  0x98   : > { %345 = vmatmul.mubr.f32.vlgmr.msra.gmra.mrb[0].mxu0 %v202_v33 }
 0x16b   : > { %v346_v42 = vpop.f32.mrb[0].mxu0 }
 0x16c   : > { %v347_v43 = vadd.f32 %v346_v42, %v273_v39  ;;  %v348_v44 = vpop.f32.mrb[1].mxu0 }
 0x16d   : > { %v349_v45 = vadd.f32 %v348_v44, %v277_v40 }
 0x16e   : > { %617 = vtanh.f32 %v347_v43 }
 0x16f   : > { %619 = vtanh.f32 %v349_v45 }
 0x178   : > { %v618_v46 = vpop.eup %617 }
 0x179   : > { %v620_v47 = vpop.eup %619  ;;  %v353_v48 = vmul.f32 1.442695, %v618_v46 }
 0x17a   : > { %v355_v49 = vmul.f32 1.442695, %v620_v47 }
 0x17b   : > { %621 = vpow2.f32 %v353_v48 }
 0x17c   : > { %623 = vpow2.f32 %v355_v49 }
 0x185   : > { %v622_v50 = vpop.eup %621 }
 0x186   : > { %v624_v51 = vpop.eup %623 }
 0x187   : > { %v357_v52 = vadd.f32 %v624_v51, %v622_v50 }
 0x189   : > { %358 = vadd.xlane.f32.xlu0 %v357_v52 }
 0x216   : > { %v359_v53 = vpop.xlane.xlu0 %358 }
 0x217   : > { %v360_v54 = vmul.f32 0.03125, %v359_v53 }
 0x219   : > { %625 = vrcp.f32 %v360_v54 }
 0x223   : > { %v626_v55 = vpop.eup %625 }
 0x224   : > { %v363_v56 = vmul.f32 %v626_v55, %v622_v50  ;;  %v364_v57 = vmul.f32 %v626_v55, %v624_v51 }
 0x226   : > { %v365_v58 = vadd.f32 1e-10, %v363_v56  ;;  %v366_v59 = vadd.f32 1e-10, %v364_v57 }
 0x228   : > { %v367_v60 = vmul.f32 %v365_v58, %v202_v33  ;;  %v368_v61 = vmul.f32 %v366_v59, %v935_v41 }
 0x22a   : > { %v369_v62 = vadd.f32 %v368_v61, %v367_v60 }
 0x22c   : > { %371 = vrot.lane.b32.xlu0 %v369_v62, %s761_s4 }
 0x29e   : > { %v372_v63 = vpop.permute.xlu0 %371 }
 0x29f   : > { %v374_v0 = vadd.f32 %v372_v63, %v369_v62 }
 0x2a1   : > { %376 = vrot.lane.b32.xlu1 %v374_v0, %s762_s25 }
 0x313   : > { %v377_v1 = vpop.permute.xlu1 %376 }
 0x314   : > { %v379_v2 = vadd.f32 %v377_v1, %v374_v0 }
 0x316   : > { %381 = vst.msk [vmem:[%s201_s8] sm:$0xff] %vm380_vm0, %v379_v2 }
 0x317   : > { %698 = shalt.err (!%p695_p7)
}
 0x318   : > { %s699_s30 = scalar_lea.hbm %s948_s27, 128  ;;  %s703_s18 = scalar_lea.hbm %s995_s3, 256 }
 0x319   : > { %p700_p9 = scmp.ne.s32.totalorder %s948_s27, %s699_s30  ;;  %p704_p0 = scmp.lt.u32.totalorder %s948_s27, %s995_s3 }
 0x31a   : > { %p705_p11 = scmp.lt.u32.totalorder %s703_s18, %s699_s30  ;;  %p707_p4 = scmp.lt.u32.totalorder %s699_s30, %s948_s27 }
 0x31b   : > { %p701_p2 = pnand %p700_p9, %p875_p12 }
 0x31c   : > { %p706_p1 = por %p705_p11, %p704_p0 }
 0x31d   : > { %p702_p5 = pneg %p701_p2 }
 0x31e   : > { %p708_p6 = por %p707_p4, %p706_p1 }
 0x320   : > { %p709_p8 = pnand %p708_p6, %p702_p5 }
 0x322   : > { %712 = shalt.err (!%p709_p8)
}
 0x323   : > { %562 = dma.vmem_to_hbm [thread:$0]  (%p875_p12), %s950_s9, 128, %s948_s27, %s383_s28  }
 0x324 PF: > { %s408_s25 = sand.u32 1, %s743_s12   ;;  %p1010_p10 = scmp.ne.s32.totalorder %s1000_s19, 0 }
 0x325   : > { %p1011_p13 = scmp.ge.s32.totalorder %s755_s15, 2  ;;  %s409_s26 = scalar_lea.sflag [#allocation4], %s408_s25 }
 0x327   : > { %p573_p3 = pnand %p1011_p13, %p1010_p10 }
 0x329   : > { %738 = dma.done.wait (!%p573_p3), %s409_s26, 128  }
 0x32a   : > { %740 = vsyncadd (!%p573_p3), %s409_s26, 4294967168  ;;  %p17_p7 = scmp.ge.s32.totalorder %s840_s24, 4   ;;  %s1012_s12 = smov %s747_s13 }
 0x32b   : > { %s1013_s13 = smov %s751_s14  ;;  %s1014_s14 = smov %s871_s17 }
 0x32c   : > { %s1015_s15 = smov %s840_s24  ;;  %19 = sbr.rel (!%p17_p7) target bundleno = 6 (0x6), region = 81 }
 0x333   :  { %414 = vsyncpa [#allocation3], 1 }
 0x334   :  { %416 = vsyncpa [#allocation3 + $0x1], 1 }
 0x335   :  { %417 = vsyncpa [#allocation6], 1 }
 0x336   :  { %418 = vsyncpa [#allocation4], 1 }
 0x337   :  { %420 = vsyncpa [#allocation4 + $0x1], 1 }

</bundles_post_ra>
